<compile_context>
chip_gen: v7x
topology: tpu7x:2x2x1
jax: 0.10.0
libtpu: 0.0.40
codegen_flags: <defaults>
</compile_context>

<pallas_src>
import numpy as np
import jax
import jax.numpy as jnp
from jax import lax
from jax.experimental import pallas as pl
from jax.experimental.pallas import tpu as pltpu

C_IN = 16                      # input_channels (must be divisible by 4)
BATCH, H, W = 2, 16, 16
M = BATCH * H * W              # 512 -> lane dimension of every GEMM inside the kernel
EPS = 1e-5
PAD = 8                        # sublane alignment for activations / weight row blocks


def _pad8(n):
    return ((n + PAD - 1) // PAD) * PAD


# ---------------------------------------------------------------------------
# Static description of every Conv2d (+BN+PReLU) block in DCE_Module
# ---------------------------------------------------------------------------
def _conv_specs(c):
    """(name, cin, cout, kh, kw, ph, pw, dil) for every Conv2d in DCE_Module."""
    cs, cd = c // 4, c // 2
    specs = [("local_conv", c, c, 3, 3, 1, 1, 1)]
    for b in range(1, 5):
        specs.append((f"p{b}_cr", c, cs, 1, 1, 0, 0, 1))
    for b, k in zip(range(1, 5), (3, 5, 7, 9)):
        cin_ab = cs if b == 1 else cd
        p = (k - 1) // 2
        d = 2 * b + 1
        specs += [
            (f"p{b}_d1_a", cin_ab, cs, k, 1, p, 0, 1),
            (f"p{b}_d1_b", cs, cs, 1, k, 0, p, 1),
            (f"p{b}_d2_a", cin_ab, cs, 1, k, 0, p, 1),
            (f"p{b}_d2_b", cs, cs, k, 1, p, 0, 1),
            (f"p{b}_fusion", cd, cs, 1, 1, 0, 0, 1),
            (f"p{b}_dc", cs, cs, 3, 3, d, d, d),
        ]
    specs.append(("fusion", 2 * c, c, 1, 1, 0, 0, 1))
    return specs


def _gen_conv_params(key, cout, cin, kh, kw):
    k1, k2, k3, k4, k5, k6 = jax.random.split(key, 6)
    w = jax.random.normal(k1, (cout, cin, kh, kw), jnp.float32) * 0.1
    conv_b = jax.random.normal(k2, (cout,), jnp.float32) * 0.1
    gamma = 1.0 + 0.1 * jax.random.normal(k3, (cout,), jnp.float32)
    beta = 0.1 * jax.random.normal(k4, (cout,), jnp.float32)
    mean = 0.1 * jax.random.normal(k5, (cout,), jnp.float32)
    var = 1.0 + 0.1 * jax.random.uniform(k6, (cout,), jnp.float32)
    scale = gamma / jnp.sqrt(var + EPS)            # folded inference BatchNorm
    bias = beta + scale * (conv_b - mean)          # includes folded conv bias
    alpha = 0.25                                   # nn.PReLU() default scalar slope
    return {"w": w, "scale": scale, "bias": bias, "alpha": alpha}


# ---------------------------------------------------------------------------
# Parameter packing: one weight operand (BN scale + bias folded in), one alpha vector
# ---------------------------------------------------------------------------
def init_dce_params(key, c):
    """Returns (wpack, alphas, meta, raw).

    wpack : (rows, max_kcols) f32.  Per kernel-layer a contiguous (cout_p, kcols) block:
            column 0 holds the folded BN/conv bias (multiplied inside the GEMM by a
            constant ones row), columns PAD.. hold, per tap and per (padded) input part,
            the BN-scale-folded conv weights.
    alphas: (n_convs,) f32 — one PReLU slope per original Conv+BN+PReLU block (SMEM).
    meta  : static per-layer descriptors (row/col offsets, taps, sub-blocks).
    raw   : unpacked per-conv parameters for the pure-JAX reference.
    """
    cs = c // 4
    specs = _conv_specs(c)
    spec_by_name = {s[0]: s for s in specs}
    keys = jax.random.split(key, len(specs))
    raw = {s[0]: _gen_conv_params(k, s[2], s[1], s[3], s[4]) for s, k in zip(specs, keys)}
    alpha_idx = {s[0]: i for i, s in enumerate(specs)}
    alphas = np.array([float(raw[s[0]]["alpha"]) for s in specs], np.float32)

    # One "kernel layer" = one GEMM: (lname, [batched conv names],
    # [real cin per input part, torch concat order], kh, kw, ph, pw, dil).
    plan = [("cr_all", [f"p{b}_cr" for b in range(1, 5)], [c], 1, 1, 0, 0, 1),
            ("local_conv", ["local_conv"], [c], 3, 3, 1, 1, 1)]
    for b, k in zip(range(1, 5), (3, 5, 7, 9)):
        p, d = (k - 1) // 2, 2 * b + 1
        ab_parts = [cs] if b == 1 else [cs, cs]
        plan += [
            (f"p{b}_d1_a", [f"p{b}_d1_a"], ab_parts, k, 1, p, 0, 1),
            (f"p{b}_d1_b", [f"p{b}_d1_b"], [cs], 1, k, 0, p, 1),
            (f"p{b}_d2_a", [f"p{b}_d2_a"], ab_parts, 1, k, 0, p, 1),
            (f"p{b}_d2_b", [f"p{b}_d2_b"], [cs], k, 1, p, 0, 1),
            (f"p{b}_fusion", [f"p{b}_fusion"], [cs, cs], 1, 1, 0, 0, 1),
            (f"p{b}_dc", [f"p{b}_dc"], [cs], 3, 3, d, d, d),
        ]
    plan.append(("fusion", ["fusion"], [cs, cs, cs, cs, c], 1, 1, 0, 0, 1))

    meta, w_rows, max_kcols = {}, 0, 0
    for (lname, convs, parts_real, kh, kw, ph, pw, dil) in plan:
        taps = [(i * dil - ph, j * dil - pw) for i in range(kh) for j in range(kw)]
        parts_pad = [_pad8(r) for r in parts_real]
        cin_p = sum(parts_pad)
        kcols = PAD + cin_p * len(taps)            # bias/ones block is columns 0..PAD-1
        sub = []
        for n in convs:
            cout_real = spec_by_name[n][2]
            sub.append((n, _pad8(cout_real), cout_real, alpha_idx[n]))
        cout_p = sum(s[1] for s in sub)
        meta[lname] = dict(w_off=w_rows, cout_p=cout_p, cin_p=cin_p, kcols=kcols,
                           taps=taps, sub=sub)
        w_rows += cout_p
        max_kcols = max(max_kcols, kcols)

    wpack = np.zeros((w_rows, max_kcols), np.float32)
    for (lname, convs, parts_real, kh, kw, ph, pw, dil) in plan:
        lm = meta[lname]
        parts_pad = [_pad8(r) for r in parts_real]
        cin_p = lm["cin_p"]
        r0 = lm["w_off"]
        for (cname, srows, cout_real, _aidx) in lm["sub"]:
            prm = raw[cname]
            w_np = np.asarray(prm["w"], np.float32)              # (cout, cin_real, kh, kw)
            scale = np.asarray(prm["scale"], np.float32)[:, None]
            for t, (i, j) in enumerate([(i, j) for i in range(kh) for j in range(kw)]):
                creal, cpad = 0, 0
                for pr, pp in zip(parts_real, parts_pad):
                    col0 = PAD + t * cin_p + cpad
                    wpack[r0:r0 + cout_real, col0:col0 + pr] = \
                        scale * w_np[:, creal:creal + pr, i, j]   # BN scale folded in
                    creal += pr
                    cpad += pp
            wpack[r0:r0 + cout_real, 0] = np.asarray(prm["bias"], np.float32)
            r0 += srows
    return jnp.asarray(wpack), jnp.asarray(alphas), meta, raw


# ---------------------------------------------------------------------------
# Tiny probe kernel: pin the pltpu.roll direction convention at init time.
# ---------------------------------------------------------------------------
def _detect_roll_sign():
    n = 256
    x = jnp.tile(jnp.arange(n, dtype=jnp.float32)[None, :], (8, 1))

    def probe(x_ref, o_ref):
        o_ref[...] = pltpu.roll(x_ref[...], shift=3, axis=1)

    y = pl.pallas_call(
        probe,
        out_shape=jax.ShapeDtypeStruct((8, n), jnp.float32),
        in_specs=[pl.BlockSpec(memory_space=pltpu.MemorySpace.VMEM)],
        out_specs=pl.BlockSpec(memory_space=pltpu.MemorySpace.VMEM),
    )(x)
    if bool(jnp.allclose(y, jnp.roll(x, 3, axis=1))):
        return 1      # pltpu.roll matches jnp.roll
    if bool(jnp.allclose(y, jnp.roll(x, -3, axis=1))):
        return -1     # opposite convention
    raise RuntimeError("unexpected pltpu.roll semantics")


# ---------------------------------------------------------------------------
# Fused DCE forward: a single Pallas kernel for the whole module
# ---------------------------------------------------------------------------
def build_dce_forward(meta, c, batch, hh, ww, roll_sign, wpack_shape, n_alpha):
    m = batch * hh * ww
    max_kcols = wpack_shape[1]

    def kernel(x_ref, w_ref, a_ref, o_ref, stack_ref):
        lane = lax.broadcasted_iota(jnp.int32, (1, m), 1)
        h_idx = (lane // ww) % hh            # spatial row of each flattened position
        w_idx = lane % ww                    # spatial column
        # Constant "ones" block (row 0 = 1, rows 1..PAD-1 = 0): multiplied by weight
        # column 0 (folded bias) it adds the bias inside the GEMM.  Written once.
        stack_ref[0:PAD, :] = (lax.broadcasted_iota(jnp.int32, (PAD, m), 0) == 0
                               ).astype(jnp.float32)

        mask_cache = {}

        def tap_mask(dy, dx):
            if (dy, dx) not in mask_cache:
                conds = []
                if dy != 0:
                    conds += [h_idx + dy >= 0, h_idx + dy < hh]
                if dx != 0:
                    conds += [w_idx + dx >= 0, w_idx + dx < ww]
                ok = conds[0]
                for cnd in conds[1:]:
                    ok = ok & cnd
                mask_cache[(dy, dx)] = ok.astype(jnp.float32)
            return mask_cache[(dy, dx)]

        def shifted(act, dy, dx):
            # shifted[:, n*hh*ww + h*ww + w] == act at spatial (h+dy, w+dx), 0 outside.
            if dy == 0 and dx == 0:
                return act
            off = dy * ww + dx
            r = pltpu.roll(act, shift=(roll_sign * (-off)) % m, axis=1)
            return r * tap_mask(dy, dx)

        def layer(parts, lname):
            """Conv+BN+PReLU as ONE GEMM: im2col stack in the shared VMEM scratch
            (channel-concat parts land adjacent, 8-aligned), bias folded in via the
            ones block, BN scale pre-folded into the weights, scalar PReLU epilogue."""
            lm = meta[lname]
            cin_p, kcols = lm["cin_p"], lm["kcols"]
            for t, (dy, dx) in enumerate(lm["taps"]):
                row = PAD + t * cin_p
                for part in parts:
                    rows = part.shape[0]
                    stack_ref[row:row + rows, :] = shifted(part, dy, dx)
                    row += rows
            wmat = w_ref[lm["w_off"]:lm["w_off"] + lm["cout_p"], 0:kcols]
            y = jnp.dot(wmat, stack_ref[0:kcols, :], preferred_element_type=jnp.float32)
            outs, r = [], 0
            for (_, srows, _, aidx) in lm["sub"]:
                blk = y[r:r + srows]
                a = a_ref[aidx]
                outs.append(jnp.where(blk >= 0.0, blk, a * blk))   # PReLU
                r += srows
            return outs if len(outs) > 1 else outs[0]

        x = x_ref[...]                               # (c, m), lane-dense

        p_cr = layer([x], "cr_all")                  # 4 x (8, m): 4 reductions, 1 GEMM
        prev, p_outs = None, []
        for b in range(1, 5):
            inp = [p_cr[b - 1]] if b == 1 else [p_cr[b - 1], prev]
            d1 = layer([layer(inp, f"p{b}_d1_a")], f"p{b}_d1_b")
            d2 = layer([layer(inp, f"p{b}_d2_a")], f"p{b}_d2_b")
            pb = layer([d1, d2], f"p{b}_fusion")
            pb = layer([pb], f"p{b}_dc")
            p_outs.append(pb)
            prev = pb
        local = layer([x], "local_conv")
        o_ref[...] = layer(p_outs + [local], "fusion")

    flops = sum(2 * lm["cout_p"] * lm["kcols"] * m for lm in meta.values())
    bytes_accessed = 4 * (c * m + wpack_shape[0] * wpack_shape[1] + n_alpha + c * m)

    fused = pl.pallas_call(
        kernel,
        out_shape=jax.ShapeDtypeStruct((c, m), jnp.float32),
        in_specs=[pl.BlockSpec(memory_space=pltpu.MemorySpace.VMEM),    # x
                  pl.BlockSpec(memory_space=pltpu.MemorySpace.VMEM),    # packed weights
                  pl.BlockSpec(memory_space=pltpu.MemorySpace.SMEM)],   # PReLU alphas
        out_specs=pl.BlockSpec(memory_space=pltpu.MemorySpace.VMEM),
        scratch_shapes=[pltpu.VMEM((max_kcols, m), jnp.float32)],       # shared im2col stack
        cost_estimate=pl.CostEstimate(flops=flops, transcendentals=0,
                                      bytes_accessed=bytes_accessed),
        compiler_params=pltpu.CompilerParams(vmem_limit_bytes=32 * 1024 * 1024),
    )

    def forward(x_nchw, wpack, alphas):
        x_cm = jnp.transpose(x_nchw, (1, 0, 2, 3)).reshape(c, m)   # lane-dense (C, N*H*W)
        o_cm = fused(x_cm, wpack, alphas)
        return jnp.transpose(o_cm.reshape(c, batch, hh, ww), (1, 0, 2, 3))

    return forward


# ---------------------------------------------------------------------------
# Pure-JAX reference (same folded-BN inference semantics) for validation
# ---------------------------------------------------------------------------
def _ref_conv_bn_prelu(x, p, ph, pw, dil):
    y = lax.conv_general_dilated(
        x, p["w"], window_strides=(1, 1), padding=((ph, ph), (pw, pw)),
        rhs_dilation=(dil, dil), dimension_numbers=("NCHW", "OIHW", "NCHW"),
        precision=lax.Precision.HIGHEST)
    y = y * p["scale"][None, :, None, None] + p["bias"][None, :, None, None]
    return jnp.where(y >= 0.0, y, p["alpha"] * y)


def ref_dce_forward(x, raw, c):
    pads = {s[0]: (s[5], s[6], s[7]) for s in _conv_specs(c)}

    def cbp(name, inp):
        ph, pw, dil = pads[name]
        return _ref_conv_bn_prelu(inp, raw[name], ph, pw, dil)

    cat = lambda ts: jnp.concatenate(ts, axis=1)
    p1_in = cbp("p1_cr", x)
    p1 = cbp("p1_fusion", cat([cbp("p1_d1_b", cbp("p1_d1_a", p1_in)),
                               cbp("p1_d2_b", cbp("p1_d2_a", p1_in))]))
    p1 = cbp("p1_dc", p1)
    p2_in = cat([cbp("p2_cr", x), p1])
    p2 = cbp("p2_fusion", cat([cbp("p2_d1_b", cbp("p2_d1_a", p2_in)),
                               cbp("p2_d2_b", cbp("p2_d2_a", p2_in))]))
    p2 = cbp("p2_dc", p2)
    p3_in = cat([cbp("p3_cr", x), p2])
    p3 = cbp("p3_fusion", cat([cbp("p3_d1_b", cbp("p3_d1_a", p3_in)),
                               cbp("p3_d2_b", cbp("p3_d2_a", p3_in))]))
    p3 = cbp("p3_dc", p3)
    p4_in = cat([cbp("p4_cr", x), p3])
    p4 = cbp("p4_fusion", cat([cbp("p4_d1_b", cbp("p4_d1_a", p4_in)),
                               cbp("p4_d2_b", cbp("p4_d2_a", p4_in))]))
    p4 = cbp("p4_dc", p4)
    local = cbp("local_conv", x)
    return cbp("fusion", cat([p1, p2, p3, p4, local]))


if __name__ == "__main__":
    key = jax.random.PRNGKey(0)
    kx, kp = jax.random.split(key)
    x = jax.random.normal(kx, (BATCH, C_IN, H, W), jnp.float32)   # NCHW, like PyTorch

    wpack, alphas, meta, raw = init_dce_params(kp, C_IN)
    roll_sign = _detect_roll_sign()
    forward = jax.jit(build_dce_forward(meta, C_IN, BATCH, H, W, roll_sign,
                                        wpack.shape, int(alphas.shape[0])))

    out = jax.block_until_ready(forward(x, wpack, alphas))
    assert out.shape == (BATCH, C_IN, H, W), out.shape
    assert bool(jnp.all(jnp.isfinite(out)))

    ref = ref_dce_forward(x, raw, C_IN)
    err = float(jnp.max(jnp.abs(out - ref)))
    ref_scale = float(jnp.max(jnp.abs(ref)))
    # In-kernel dots run at the MXU's default (bf16-pass) precision while the reference
    # uses Precision.HIGHEST; the tolerance covers that decomposition.
    assert err <= 2e-3 + 2.5e-2 * ref_scale, \
        f"max |pallas - reference| = {err} (ref scale {ref_scale})"
    print("KERNEL_OK")
</pallas_src>

<mosaic_0001>
module attributes {stable_mosaic.version = 11 : i64} {
  func.func @probe(%arg0: memref<8x256xf32, #tpu.memory_space<vmem>>, %arg1: memref<8x256xf32, #tpu.memory_space<vmem>>) attributes {dimension_semantics = [], scalar_prefetch = 0 : i64, scratch_operands = 0 : i64, tpu.core_type = #tpu.core_type<tc>} {
    %c0 = arith.constant 0 : index
    %c0_0 = arith.constant 0 : index
    %0 = vector.load %arg0[%c0, %c0_0] : memref<8x256xf32, #tpu.memory_space<vmem>>, vector<8x256xf32>
    %c3_i32 = arith.constant 3 : i32
    %1 = tpu.dynamic_rotate %0 by %c3_i32 dim 1 : vector<8x256xf32>, i32 -> vector<8x256xf32>
    %c0_1 = arith.constant 0 : index
    %c0_2 = arith.constant 0 : index
    %2 = vector.load %arg1[%c0_1, %c0_2] : memref<8x256xf32, #tpu.memory_space<vmem>>, vector<8x256xf32>
    tpu.vector_store %arg1[%c0_1, %c0_2], %1 {strides = array<i32>} : memref<8x256xf32, #tpu.memory_space<vmem>>, vector<8x256xf32>,
    return
  }
}

</mosaic_0001>

<bundles_post_ra>
// kernel: tpu_custom_call.1
= control target key start
LH: loop header
LB: loop body
LE: loop exit
PB: predicated region body
PF: predicated region fallthrough
CT: control target
= control target key end

     0   :  { %6 = vsyncpa [#allocation3], 0  ;;  %s137_s0 = inlined_call_operand.hbm [shape: f32[8,256], index: 0, kind: input, shape index: {}]   ;;  %s138_s1 = inlined_call_operand.hbm [shape: f32[8,256], index: 1, kind: output, shape index: {}]  }
   0x1   :  { %7 = vsyncpa [#allocation4], 0  ;;  %s100_s6 = smov [#allocation2]   ;;  %s52_s10 = scalar_lea.hbm %s137_s0, 256 }
   0x2   :  { %s14_s7 = sshll.u32 %s100_s6, 4  ;;  %p53_p0 = scmp.ne.s32.totalorder %s137_s0, %s52_s10  ;;  %s15_s7 = int_to_ptr.vmem [resolvable:$true] %s14_s7 }
   0x3   :  { %p56_p1 = scmp.lt.u32.totalorder %s52_s10, %s137_s0 }
   0x5   :  { %p58_p2 = pnand %p56_p1, %p53_p0 }
   0x7   :  { %61 = shalt.err (!%p58_p2)
}
   0x8   :  { %s62_s15 = scalar_lea.vmem %s15_s7, 256  ;;  %p67_p4 = scmp.lt.s32.totalorder %s15_s7, %s15_s7 }
   0x9   :  { %p63_p3 = scmp.ne.s32.totalorder %s15_s7, %s62_s15  ;;  %p68_p5 = scmp.lt.s32.totalorder %s62_s15, %s62_s15 }
   0xb   :  { %p69_p6 = por %p68_p5, %p67_p4 }
   0xd   :  { %p70_p7 = pnand %p69_p6, %p63_p3 }
   0xf   :  { %73 = shalt.err (!%p70_p7)
}
  0x10   :  { %17 = dma.hbm_to_vmem [thread:$0]  %s137_s0, 256, %s15_s7, [#allocation3]  }
  0x11   :  { %96 = dma.done.wait [#allocation3], 256  }
  0x12   :  { %97 = vsyncadd [#allocation3], 4294967040  ;;  %v21_v0 = vld [vmem:[#allocation2] sm:$0xff]  ;;  %s101_s18 = smov 3   ;;  %v22_v1 = vld [vmem:[#allocation2 + $0x8] sm:$0xff]  ;;  %v27_v2 = vlaneseq  ;;  %s102_s19 = smov [#allocation5]  }
  0x13   :  { %23 = vrot.lane.b32.xlu0 %v21_v0, %s101_s18  ;;  %s40_s20 = sshll.u32 %s102_s19, 4  ;;  %s41_s20 = int_to_ptr.vmem [resolvable:$true] %s40_s20 }
  0x14   :  { %v28_v3 = vand.u32 127, %v27_v2  ;;  %s74_s0 = scalar_lea.vmem %s41_s20, 256  ;;  %p79_p9 = scmp.lt.s32.totalorder %s41_s20, %s41_s20 }
  0x15   :  { %p75_p8 = scmp.ne.s32.totalorder %s41_s20, %s74_s0  ;;  %p80_p10 = scmp.lt.s32.totalorder %s74_s0, %s74_s0 }
  0x16   :  { %vm29_vm0 = vcmp.lt.s32.totalorder %v28_v3, 3 }
  0x17   :  { %25 = vrot.lane.b32.xlu0 %v22_v1, %s101_s18  ;;  %p81_p11 = por %p80_p10, %p79_p9 }
  0x19   :  { %p82_p12 = pnand %p81_p11, %p75_p8 }
  0x85   :  { %v24_v4 = vpop.permute.xlu0 %23 }
  0x89   :  { %v26_v5 = vpop.permute.xlu0 %25 }
  0x8a   :  { %v30_v6 = vsel %vm29_vm0, %v24_v4, %v26_v5  ;;  %v31_v7 = vsel %vm29_vm0, %v26_v5, %v24_v4 }
  0x8b   :  { %32 = vst [vmem:[#allocation5] sm:$0xff] %v31_v7  ;;  %33 = vst [vmem:[#allocation5 + $0x8] sm:$0xff] %v30_v6 }
  0x8c   :  { %85 = shalt.err (!%p82_p12)
}
  0x8d   :  { %s86_s23 = scalar_lea.hbm %s138_s1, 256 }
  0x8e   :  { %p87_p13 = scmp.ne.s32.totalorder %s138_s1, %s86_s23  ;;  %p90_p0 = scmp.lt.u32.totalorder %s86_s23, %s138_s1 }
  0x90   :  { %p92_p1 = pnand %p90_p0, %p87_p13 }
  0x92   :  { %95 = shalt.err (!%p92_p1)
}
  0x93   :  { %43 = dma.vmem_to_hbm [thread:$0]  %s41_s20, 256, %s138_s1, [#allocation4]  }
  0x94   :  { %98 = dma.done.wait [#allocation4], 256  }
  0x95   :  { %99 = vsyncadd [#allocation4], 4294967040 }
  0x96   :  { %47 = vsyncpa [#allocation3], 1 }
  0x97   :  { %48 = vsyncpa [#allocation4], 1 }

</bundles_post_ra>
